<compile_context>
chip_gen: v5e
topology: v5e:2x2
jax: 0.10.0
libtpu: 0.0.40
codegen_flags: <defaults>
</compile_context>

<pallas_src>
import functools

import jax
import jax.numpy as jnp
from jax import lax
from jax.experimental import pallas as pl
from jax.experimental.pallas import tpu as pltpu


# ----------------------------------------------------------------------------
# Fused kernel: one batch element -> QKV (all heads), causal softmax attention,
# concat heads, output projection + bias.
# ----------------------------------------------------------------------------
def _mha_kernel(x_ref, wqkv_ref, wproj_ref, bproj_ref, o_ref,
                q_scr, k_scr, v_scr, head_scr, *, num_heads):
    # x_ref:     (1, T, C)  bf16   current batch element
    # wqkv_ref:  (C, 3C)    bf16   in-features-first [Wq * C**-0.5 | Wk | Wv]
    # wproj_ref: (C, C)     bf16   in-features-first output projection
    # bproj_ref: (1, C)     f32
    # o_ref:     (1, T, C)  f32    lane-dense output block
    # q_scr/k_scr/v_scr/head_scr: VMEM (H, T, hs) f32 head-major slabs
    x = x_ref[0]                                    # (T, C) bf16
    T, C = x.shape
    H = num_heads
    hs = C // H

    # Fused full-width QKV projection for all heads (bf16 MXU, f32 accumulate):
    # (T, C) x (C, 3C) -> (T, 3C)
    qkv = jnp.dot(x, wqkv_ref[...], preferred_element_type=jnp.float32)

    # Repack into head-major scratch.  Static lane slices (h is a Python int)
    # -> plain copies; inside the head loop each head is then a leading-dim
    # (well-aligned) access instead of a sub-128-lane dynamic column slice.
    for h in range(H):
        lo = h * hs
        q_scr[h] = qkv[:, lo:lo + hs]
        k_scr[h] = qkv[:, C + lo:C + lo + hs]
        v_scr[h] = qkv[:, 2 * C + lo:2 * C + lo + hs]

    # Causal additive bias, built once per grid step.  Large finite negative
    # (not -inf) so a fully-masked row can never produce exp(-inf + inf) NaNs.
    row = lax.broadcasted_iota(jnp.int32, (T, T), 0)
    col = lax.broadcasted_iota(jnp.int32, (T, T), 1)
    mask_bias = jnp.where(col <= row, 0.0, -1e30).astype(jnp.float32)

    dn_qkt = (((1,), (1,)), ((), ()))   # q . k^T : contract the hs dim

    # One head live at a time (pl.loop -> scf.for): bounds live state to a
    # single (T, T) score/exp tile instead of H of them.
    # TODO(synk): KV-tiled online softmax here for long T (see header TODO).
    @pl.loop(0, H)
    def _(h):
        q = q_scr[h].astype(jnp.bfloat16)           # (T, hs)
        k = k_scr[h].astype(jnp.bfloat16)
        v = v_scr[h].astype(jnp.bfloat16)

        # scores (T, T); the C**-0.5 scale is already folded into Wq.
        wei = lax.dot_general(q, k, dn_qkt, preferred_element_type=jnp.float32)
        wei = wei + mask_bias

        # Numerically stable softmax.  exp + approx reciprocal run on the EUP
        # slot (~free next to the MXU work).  NOTE (v6e/v7x): with bf16 MXU
        # operands the single EUP can become the binding unit for small hs —
        # keep this path to one exp + one reciprocal; max/sum stay on the XLU.
        m = jnp.max(wei, axis=-1, keepdims=True)
        p = jnp.exp(wei - m)
        denom = jnp.sum(p, axis=-1, keepdims=True)
        p = p * pl.reciprocal(denom, approx=True)

        head_scr[h] = jnp.dot(p.astype(jnp.bfloat16), v,
                              preferred_element_type=jnp.float32)   # (T, hs)

    # Concatenate heads (static reads) -> (T, C) lane-dense, then the fused
    # output projection as one canonical (M,K)x(K,N) matmul + bias.
    heads = jnp.concatenate([head_scr[h] for h in range(H)], axis=-1)
    y = jnp.dot(heads.astype(jnp.bfloat16), wproj_ref[...],
                preferred_element_type=jnp.float32)
    o_ref[0] = (y + bproj_ref[...]).astype(o_ref.dtype)


# ----------------------------------------------------------------------------
# Wrapper
# ----------------------------------------------------------------------------
def multi_head_attention(x, wq, wk, wv, w_proj, b_proj):
    """x: (B, T, C); wq/wk/wv: (H, hs, C) torch (out,in) per head;
    w_proj: (C, C) torch (out,in); b_proj: (C,)."""
    B, T, C = x.shape
    H, hs, _ = wq.shape
    assert H * hs == C, "head_num * head_size must equal n_embd"
    out_dtype = x.dtype

    # Wrapper-side weight prep (one-time XLA ops, free vs. per-grid-step work):
    # in-features-first layout, fold the module's C**-0.5 scale (n_embd, NOT
    # head_size — intentionally matches the PyTorch source) into Wq, cast all
    # MXU operands to bf16 (f32 accumulation happens inside the kernel).
    scale = jnp.float32(C) ** jnp.float32(-0.5)
    w_q = wq.reshape(C, C).T * scale
    w_k = wk.reshape(C, C).T
    w_v = wv.reshape(C, C).T
    w_qkv = jnp.concatenate([w_q, w_k, w_v], axis=1).astype(jnp.bfloat16)   # (C, 3C)
    w_projT = w_proj.T.astype(jnp.bfloat16)                                 # (C, C)
    b_proj2 = b_proj.reshape(1, C).astype(jnp.float32)
    x_bf = x.astype(jnp.bfloat16)

    # Explicit VMEM budget with per-generation cap (leave headroom: ~48 MiB on
    # v7x's 64 MiB, ~96 MiB on v5e/v6e's 128 MiB).
    bf16_b, f32_b = 2, 4
    resident = 2 * (w_qkv.size + w_projT.size) * bf16_b + C * f32_b   # dbl-buffered weights
    streamed = 2 * T * C * (bf16_b + f32_b)                           # x in + y out, dbl-buffered
    scratch = 4 * H * T * hs * f32_b                                  # q/k/v/head slabs
    work = (3 * T * C + 2 * T * T + 2 * T * C) * f32_b                # qkv, ONE score tile, heads, y
    need = 2 * (resident + streamed + scratch + work)                 # 2x compiler headroom
    try:
        phys = int(pltpu.get_tpu_info().vmem_capacity_bytes)
    except Exception:  # unknown chip -> assume v7x-sized (64 MiB) VMEM
        phys = 64 << 20
    cap = max(32 << 20, (phys * 3) // 4)
    vmem_limit = int(min(cap, max(32 << 20, need)))

    # Advisory cost estimate so XLA can schedule around the custom call.
    flops = 2 * B * (T * C * 3 * C + 2 * H * T * T * hs + T * C * C)
    transcendentals = B * H * T * T
    bytes_accessed = (int(x_bf.size) * bf16_b
                      + (int(w_qkv.size) + int(w_projT.size)) * bf16_b
                      + C * f32_b + B * T * C * f32_b)
    cost = pl.CostEstimate(flops=flops, transcendentals=transcendentals,
                           bytes_accessed=bytes_accessed)

    kernel = functools.partial(_mha_kernel, num_heads=H)

    out = pl.pallas_call(
        kernel,
        out_shape=jax.ShapeDtypeStruct((B, T, C), out_dtype),
        grid_spec=pltpu.PrefetchScalarGridSpec(
            num_scalar_prefetch=0,
            grid=(B,),
            in_specs=[
                pl.BlockSpec((1, T, C), lambda b: (b, 0, 0)),     # x (bf16)
                pl.BlockSpec((C, 3 * C), lambda b: (0, 0)),       # fused QKV weight (resident)
                pl.BlockSpec((C, C), lambda b: (0, 0)),           # W_proj^T (resident)
                pl.BlockSpec((1, C), lambda b: (0, 0)),           # b_proj (resident)
            ],
            out_specs=pl.BlockSpec((1, T, C), lambda b: (b, 0, 0)),
            scratch_shapes=[pltpu.VMEM((H, T, hs), jnp.float32)] * 4,
        ),
        compiler_params=pltpu.CompilerParams(
            dimension_semantics=("parallel",),      # B>=2 keeps both v7x TCs busy
            vmem_limit_bytes=vmem_limit),
        cost_estimate=cost,
    )(x_bf, w_qkv, w_projT, b_proj2)

    return out


# ----------------------------------------------------------------------------
# Pure-JAX f32 reference for sanity checking
# ----------------------------------------------------------------------------
def _ref_mha(x, wq, wk, wv, w_proj, b_proj):
    B, T, C = x.shape
    H, hs, _ = wq.shape
    q = jnp.einsum("btc,hsc->bhts", x, wq)
    k = jnp.einsum("btc,hsc->bhts", x, wk)
    v = jnp.einsum("btc,hsc->bhts", x, wv)
    wei = jnp.einsum("bhts,bhus->bhtu", q, k) * (C ** -0.5)
    mask = jnp.tril(jnp.ones((T, T), dtype=bool))
    wei = jnp.where(mask, wei, -jnp.inf)
    wei = jax.nn.softmax(wei, axis=-1)
    out = jnp.einsum("bhtu,bhus->bhts", wei, v)          # (B, H, T, hs)
    out = jnp.transpose(out, (0, 2, 1, 3)).reshape(B, T, H * hs)
    return out @ w_proj.T + b_proj


if __name__ == "__main__":
    # small shapes consistent with the module: n_embd = head_num * head_size
    B, T = 2, 8
    n_embd = 32
    head_num = 4
    head_size = n_embd // head_num   # 8

    key = jax.random.PRNGKey(0)
    kx, kq, kk, kv, kw, kb = jax.random.split(key, 6)

    # deterministic parameter init (nn.Linear-style uniform bounds)
    bound_in = 1.0 / (n_embd ** 0.5)
    x = jax.random.normal(kx, (B, T, n_embd), dtype=jnp.float32)
    wq = jax.random.uniform(kq, (head_num, head_size, n_embd),
                            minval=-bound_in, maxval=bound_in, dtype=jnp.float32)
    wk = jax.random.uniform(kk, (head_num, head_size, n_embd),
                            minval=-bound_in, maxval=bound_in, dtype=jnp.float32)
    wv = jax.random.uniform(kv, (head_num, head_size, n_embd),
                            minval=-bound_in, maxval=bound_in, dtype=jnp.float32)
    w_proj = jax.random.uniform(kw, (n_embd, n_embd),
                                minval=-bound_in, maxval=bound_in, dtype=jnp.float32)
    b_proj = jax.random.uniform(kb, (n_embd,),
                                minval=-bound_in, maxval=bound_in, dtype=jnp.float32)

    out = multi_head_attention(x, wq, wk, wv, w_proj, b_proj)
    out = jax.block_until_ready(out)

    ref = _ref_mha(x, wq, wk, wv, w_proj, b_proj)
    assert out.shape == (B, T, n_embd)
    # bf16 MXU operands (~0.4% quantization per operand) + approx EUP
    # reciprocal (~1e-3) give an expected |err| of a few 1e-3 at these
    # magnitudes; 2e-2 keeps ~4x margin without hiding structural bugs.
    assert jnp.allclose(out, ref, atol=2e-2, rtol=2e-2), "mismatch vs reference"

    print("KERNEL_OK")
</pallas_src>

<mosaic_0001>
module attributes {stable_mosaic.version = 11 : i64} {
  func.func @_mha_kernel(%arg0: i32, %arg1: memref<1x8x32xbf16, #tpu.memory_space<vmem>>, %arg2: memref<32x96xbf16, #tpu.memory_space<vmem>>, %arg3: memref<32x32xbf16, #tpu.memory_space<vmem>>, %arg4: memref<1x32xf32, #tpu.memory_space<vmem>>, %arg5: memref<1x8x32xf32, #tpu.memory_space<vmem>>, %arg6: memref<4x8x8xf32, #tpu.memory_space<vmem>>, %arg7: memref<4x8x8xf32, #tpu.memory_space<vmem>>, %arg8: memref<4x8x8xf32, #tpu.memory_space<vmem>>, %arg9: memref<4x8x8xf32, #tpu.memory_space<vmem>>) attributes {dimension_semantics = [#tpu.dimension_semantics<parallel>], iteration_bounds = array<i64: 2>, scalar_prefetch = 0 : i64, scratch_operands = 4 : i64, tpu.core_type = #tpu.core_type<tc>, window_params = [{transform_indices = @transform_0, window_bounds = array<i64: 1, 8, 32>}, {pipeline_mode = #tpu.pipeline_mode<synchronous>, transform_indices = @transform_1, window_bounds = array<i64: 32, 96>}, {pipeline_mode = #tpu.pipeline_mode<synchronous>, transform_indices = @transform_2, window_bounds = array<i64: 32, 32>}, {pipeline_mode = #tpu.pipeline_mode<synchronous>, transform_indices = @transform_3, window_bounds = array<i64: 1, 32>}, {transform_indices = @transform_4, window_bounds = array<i64: 1, 8, 32>}]} {
    %c0 = arith.constant 0 : index
    %c0_0 = arith.constant 0 : index
    %c0_1 = arith.constant 0 : index
    %0 = vector.load %arg1[%c0, %c0_0, %c0_1] : memref<1x8x32xbf16, #tpu.memory_space<vmem>>, vector<1x8x32xbf16>
    %1 = vector.shape_cast %0 : vector<1x8x32xbf16> to vector<8x32xbf16>
    %c0_2 = arith.constant 0 : index
    %c0_3 = arith.constant 0 : index
    %2 = vector.load %arg2[%c0_2, %c0_3] : memref<32x96xbf16, #tpu.memory_space<vmem>>, vector<32x96xbf16>
    %cst = arith.constant dense<0.000000e+00> : vector<8x96xf32>
    %3 = tpu.matmul %1, %2, %cst {dimension_numbers = #tpu.dot_dimension_numbers<[1], [0], [0], [1], [0, 0, 1, 1], [], []>} : vector<8x32xbf16>, vector<32x96xbf16>, vector<8x96xf32> -> vector<8x96xf32>
    %4 = vector.extract_strided_slice %3 {offsets = [0, 0], sizes = [8, 8], strides = [1, 1]} : vector<8x96xf32> to vector<8x8xf32>
    %c0_4 = arith.constant 0 : index
    %c0_5 = arith.constant 0 : index
    %c0_6 = arith.constant 0 : index
    %5 = vector.load %arg6[%c0_4, %c0_5, %c0_6] : memref<4x8x8xf32, #tpu.memory_space<vmem>>, vector<1x8x8xf32>
    %6 = vector.shape_cast %5 : vector<1x8x8xf32> to vector<8x8xf32>
    %7 = vector.shape_cast %4 : vector<8x8xf32> to vector<1x8x8xf32>
    tpu.vector_store %arg6[%c0_4, %c0_5, %c0_6], %7 {strides = array<i32>} : memref<4x8x8xf32, #tpu.memory_space<vmem>>, vector<1x8x8xf32>,
    %8 = vector.extract_strided_slice %3 {offsets = [0, 32], sizes = [8, 8], strides = [1, 1]} : vector<8x96xf32> to vector<8x8xf32>
    %c0_7 = arith.constant 0 : index
    %c0_8 = arith.constant 0 : index
    %c0_9 = arith.constant 0 : index
    %9 = vector.load %arg7[%c0_7, %c0_8, %c0_9] : memref<4x8x8xf32, #tpu.memory_space<vmem>>, vector<1x8x8xf32>
    %10 = vector.shape_cast %9 : vector<1x8x8xf32> to vector<8x8xf32>
    %11 = vector.shape_cast %8 : vector<8x8xf32> to vector<1x8x8xf32>
    tpu.vector_store %arg7[%c0_7, %c0_8, %c0_9], %11 {strides = array<i32>} : memref<4x8x8xf32, #tpu.memory_space<vmem>>, vector<1x8x8xf32>,
    %12 = vector.extract_strided_slice %3 {offsets = [0, 64], sizes = [8, 8], strides = [1, 1]} : vector<8x96xf32> to vector<8x8xf32>
    %c0_10 = arith.constant 0 : index
    %c0_11 = arith.constant 0 : index
    %c0_12 = arith.constant 0 : index
    %13 = vector.load %arg8[%c0_10, %c0_11, %c0_12] : memref<4x8x8xf32, #tpu.memory_space<vmem>>, vector<1x8x8xf32>
    %14 = vector.shape_cast %13 : vector<1x8x8xf32> to vector<8x8xf32>
    %15 = vector.shape_cast %12 : vector<8x8xf32> to vector<1x8x8xf32>
    tpu.vector_store %arg8[%c0_10, %c0_11, %c0_12], %15 {strides = array<i32>} : memref<4x8x8xf32, #tpu.memory_space<vmem>>, vector<1x8x8xf32>,
    %16 = vector.extract_strided_slice %3 {offsets = [0, 8], sizes = [8, 8], strides = [1, 1]} : vector<8x96xf32> to vector<8x8xf32>
    %c1 = arith.constant 1 : index
    %c0_13 = arith.constant 0 : index
    %c0_14 = arith.constant 0 : index
    %17 = vector.load %arg6[%c1, %c0_13, %c0_14] : memref<4x8x8xf32, #tpu.memory_space<vmem>>, vector<1x8x8xf32>
    %18 = vector.shape_cast %17 : vector<1x8x8xf32> to vector<8x8xf32>
    %19 = vector.shape_cast %16 : vector<8x8xf32> to vector<1x8x8xf32>
    tpu.vector_store %arg6[%c1, %c0_13, %c0_14], %19 {strides = array<i32>} : memref<4x8x8xf32, #tpu.memory_space<vmem>>, vector<1x8x8xf32>,
    %20 = vector.extract_strided_slice %3 {offsets = [0, 40], sizes = [8, 8], strides = [1, 1]} : vector<8x96xf32> to vector<8x8xf32>
    %c1_15 = arith.constant 1 : index
    %c0_16 = arith.constant 0 : index
    %c0_17 = arith.constant 0 : index
    %21 = vector.load %arg7[%c1_15, %c0_16, %c0_17] : memref<4x8x8xf32, #tpu.memory_space<vmem>>, vector<1x8x8xf32>
    %22 = vector.shape_cast %21 : vector<1x8x8xf32> to vector<8x8xf32>
    %23 = vector.shape_cast %20 : vector<8x8xf32> to vector<1x8x8xf32>
    tpu.vector_store %arg7[%c1_15, %c0_16, %c0_17], %23 {strides = array<i32>} : memref<4x8x8xf32, #tpu.memory_space<vmem>>, vector<1x8x8xf32>,
    %24 = vector.extract_strided_slice %3 {offsets = [0, 72], sizes = [8, 8], strides = [1, 1]} : vector<8x96xf32> to vector<8x8xf32>
    %c1_18 = arith.constant 1 : index
    %c0_19 = arith.constant 0 : index
    %c0_20 = arith.constant 0 : index
    %25 = vector.load %arg8[%c1_18, %c0_19, %c0_20] : memref<4x8x8xf32, #tpu.memory_space<vmem>>, vector<1x8x8xf32>
    %26 = vector.shape_cast %25 : vector<1x8x8xf32> to vector<8x8xf32>
    %27 = vector.shape_cast %24 : vector<8x8xf32> to vector<1x8x8xf32>
    tpu.vector_store %arg8[%c1_18, %c0_19, %c0_20], %27 {strides = array<i32>} : memref<4x8x8xf32, #tpu.memory_space<vmem>>, vector<1x8x8xf32>,
    %28 = vector.extract_strided_slice %3 {offsets = [0, 16], sizes = [8, 8], strides = [1, 1]} : vector<8x96xf32> to vector<8x8xf32>
    %c2 = arith.constant 2 : index
    %c0_21 = arith.constant 0 : index
    %c0_22 = arith.constant 0 : index
    %29 = vector.load %arg6[%c2, %c0_21, %c0_22] : memref<4x8x8xf32, #tpu.memory_space<vmem>>, vector<1x8x8xf32>
    %30 = vector.shape_cast %29 : vector<1x8x8xf32> to vector<8x8xf32>
    %31 = vector.shape_cast %28 : vector<8x8xf32> to vector<1x8x8xf32>
    tpu.vector_store %arg6[%c2, %c0_21, %c0_22], %31 {strides = array<i32>} : memref<4x8x8xf32, #tpu.memory_space<vmem>>, vector<1x8x8xf32>,
    %32 = vector.extract_strided_slice %3 {offsets = [0, 48], sizes = [8, 8], strides = [1, 1]} : vector<8x96xf32> to vector<8x8xf32>
    %c2_23 = arith.constant 2 : index
    %c0_24 = arith.constant 0 : index
    %c0_25 = arith.constant 0 : index
    %33 = vector.load %arg7[%c2_23, %c0_24, %c0_25] : memref<4x8x8xf32, #tpu.memory_space<vmem>>, vector<1x8x8xf32>
    %34 = vector.shape_cast %33 : vector<1x8x8xf32> to vector<8x8xf32>
    %35 = vector.shape_cast %32 : vector<8x8xf32> to vector<1x8x8xf32>
    tpu.vector_store %arg7[%c2_23, %c0_24, %c0_25], %35 {strides = array<i32>} : memref<4x8x8xf32, #tpu.memory_space<vmem>>, vector<1x8x8xf32>,
    %36 = vector.extract_strided_slice %3 {offsets = [0, 80], sizes = [8, 8], strides = [1, 1]} : vector<8x96xf32> to vector<8x8xf32>
    %c2_26 = arith.constant 2 : index
    %c0_27 = arith.constant 0 : index
    %c0_28 = arith.constant 0 : index
    %37 = vector.load %arg8[%c2_26, %c0_27, %c0_28] : memref<4x8x8xf32, #tpu.memory_space<vmem>>, vector<1x8x8xf32>
    %38 = vector.shape_cast %37 : vector<1x8x8xf32> to vector<8x8xf32>
    %39 = vector.shape_cast %36 : vector<8x8xf32> to vector<1x8x8xf32>
    tpu.vector_store %arg8[%c2_26, %c0_27, %c0_28], %39 {strides = array<i32>} : memref<4x8x8xf32, #tpu.memory_space<vmem>>, vector<1x8x8xf32>,
    %40 = vector.extract_strided_slice %3 {offsets = [0, 24], sizes = [8, 8], strides = [1, 1]} : vector<8x96xf32> to vector<8x8xf32>
    %c3 = arith.constant 3 : index
    %c0_29 = arith.constant 0 : index
    %c0_30 = arith.constant 0 : index
    %41 = vector.load %arg6[%c3, %c0_29, %c0_30] : memref<4x8x8xf32, #tpu.memory_space<vmem>>, vector<1x8x8xf32>
    %42 = vector.shape_cast %41 : vector<1x8x8xf32> to vector<8x8xf32>
    %43 = vector.shape_cast %40 : vector<8x8xf32> to vector<1x8x8xf32>
    tpu.vector_store %arg6[%c3, %c0_29, %c0_30], %43 {strides = array<i32>} : memref<4x8x8xf32, #tpu.memory_space<vmem>>, vector<1x8x8xf32>,
    %44 = vector.extract_strided_slice %3 {offsets = [0, 56], sizes = [8, 8], strides = [1, 1]} : vector<8x96xf32> to vector<8x8xf32>
    %c3_31 = arith.constant 3 : index
    %c0_32 = arith.constant 0 : index
    %c0_33 = arith.constant 0 : index
    %45 = vector.load %arg7[%c3_31, %c0_32, %c0_33] : memref<4x8x8xf32, #tpu.memory_space<vmem>>, vector<1x8x8xf32>
    %46 = vector.shape_cast %45 : vector<1x8x8xf32> to vector<8x8xf32>
    %47 = vector.shape_cast %44 : vector<8x8xf32> to vector<1x8x8xf32>
    tpu.vector_store %arg7[%c3_31, %c0_32, %c0_33], %47 {strides = array<i32>} : memref<4x8x8xf32, #tpu.memory_space<vmem>>, vector<1x8x8xf32>,
    %48 = vector.extract_strided_slice %3 {offsets = [0, 88], sizes = [8, 8], strides = [1, 1]} : vector<8x96xf32> to vector<8x8xf32>
    %c3_34 = arith.constant 3 : index
    %c0_35 = arith.constant 0 : index
    %c0_36 = arith.constant 0 : index
    %49 = vector.load %arg8[%c3_34, %c0_35, %c0_36] : memref<4x8x8xf32, #tpu.memory_space<vmem>>, vector<1x8x8xf32>
    %50 = vector.shape_cast %49 : vector<1x8x8xf32> to vector<8x8xf32>
    %51 = vector.shape_cast %48 : vector<8x8xf32> to vector<1x8x8xf32>
    tpu.vector_store %arg8[%c3_34, %c0_35, %c0_36], %51 {strides = array<i32>} : memref<4x8x8xf32, #tpu.memory_space<vmem>>, vector<1x8x8xf32>,
    %52 = tpu.iota {dimensions = array<i32: 0>} : vector<8x8xi32>
    %53 = tpu.iota {dimensions = array<i32: 1>} : vector<8x8xi32>
    %54 = arith.cmpi sle, %53, %52 : vector<8x8xi32>
    %cst_37 = arith.constant 0.000000e+00 : f32
    %cst_38 = arith.constant -1.000000e+30 : f32
    %55 = vector.broadcast %cst_37 : f32 to vector<8x8xf32>
    %56 = vector.broadcast %cst_38 : f32 to vector<8x8xf32>
    %57 = arith.select %54, %55, %56 : vector<8x8xi1>, vector<8x8xf32>
    %c0_i32 = arith.constant 0 : i32
    %c4_i32 = arith.constant 4 : i32
    %58 = arith.addi %c0_i32, %c4_i32 : i32
    %c1_i32 = arith.constant 1 : i32
    scf.for %arg10 = %c0_i32 to %58 step %c1_i32  : i32 {
      %c1_i32_60 = arith.constant 1 : i32
      %77 = arith.muli %arg10, %c1_i32_60 : i32
      %c0_i32_61 = arith.constant 0 : i32
      %78 = arith.addi %c0_i32_61, %77 : i32
      %79 = arith.index_cast %78 : i32 to index
      %c0_62 = arith.constant 0 : index
      %c0_63 = arith.constant 0 : index
      %80 = vector.load %arg6[%79, %c0_62, %c0_63] : memref<4x8x8xf32, #tpu.memory_space<vmem>>, vector<1x8x8xf32>
      %81 = vector.shape_cast %80 : vector<1x8x8xf32> to vector<8x8xf32>
      %82 = arith.truncf %81 : vector<8x8xf32> to vector<8x8xbf16>
      %83 = arith.index_cast %78 : i32 to index
      %c0_64 = arith.constant 0 : index
      %c0_65 = arith.constant 0 : index
      %84 = vector.load %arg7[%83, %c0_64, %c0_65] : memref<4x8x8xf32, #tpu.memory_space<vmem>>, vector<1x8x8xf32>
      %85 = vector.shape_cast %84 : vector<1x8x8xf32> to vector<8x8xf32>
      %86 = arith.truncf %85 : vector<8x8xf32> to vector<8x8xbf16>
      %87 = arith.index_cast %78 : i32 to index
      %c0_66 = arith.constant 0 : index
      %c0_67 = arith.constant 0 : index
      %88 = vector.load %arg8[%87, %c0_66, %c0_67] : memref<4x8x8xf32, #tpu.memory_space<vmem>>, vector<1x8x8xf32>
      %89 = vector.shape_cast %88 : vector<1x8x8xf32> to vector<8x8xf32>
      %90 = arith.truncf %89 : vector<8x8xf32> to vector<8x8xbf16>
      %cst_68 = arith.constant dense<0.000000e+00> : vector<8x8xf32>
      %91 = tpu.matmul %82, %86, %cst_68 {dimension_numbers = #tpu.dot_dimension_numbers<[1], [1], [0], [0], [0, 0, 1, 0], [], []>} : vector<8x8xbf16>, vector<8x8xbf16>, vector<8x8xf32> -> vector<8x8xf32>
      %92 = arith.addf %91, %57 : vector<8x8xf32>
      %cst_69 = arith.constant dense<0xFF800000> : vector<8xf32>
      %93 = vector.multi_reduction <maximumf>, %92, %cst_69 [1] : vector<8x8xf32> to vector<8xf32>
      %94 = vector.shape_cast %93 : vector<8xf32> to vector<8x1xf32>
      %95 = vector.broadcast %94 : vector<8x1xf32> to vector<8x8xf32>
      %96 = arith.subf %92, %95 : vector<8x8xf32>
      %97 = math.exp %96 : vector<8x8xf32>
      %cst_70 = arith.constant dense<0.000000e+00> : vector<8xf32>
      %98 = vector.multi_reduction <add>, %97, %cst_70 [1] : vector<8x8xf32> to vector<8xf32>
      %99 = vector.shape_cast %98 : vector<8xf32> to vector<8x1xf32>
      %100 = tpu.reciprocal %99 {approx = true} : vector<8x1xf32> -> vector<8x1xf32>
      %101 = vector.broadcast %100 : vector<8x1xf32> to vector<8x8xf32>
      %102 = arith.mulf %97, %101 : vector<8x8xf32>
      %103 = arith.truncf %102 : vector<8x8xf32> to vector<8x8xbf16>
      %cst_71 = arith.constant dense<0.000000e+00> : vector<8x8xf32>
      %104 = tpu.matmul %103, %90, %cst_71 {dimension_numbers = #tpu.dot_dimension_numbers<[1], [0], [0], [1], [0, 0, 1, 1], [], []>} : vector<8x8xbf16>, vector<8x8xbf16>, vector<8x8xf32> -> vector<8x8xf32>
      %105 = arith.index_cast %78 : i32 to index
      %c0_72 = arith.constant 0 : index
      %c0_73 = arith.constant 0 : index
      %106 = vector.load %arg9[%105, %c0_72, %c0_73] : memref<4x8x8xf32, #tpu.memory_space<vmem>>, vector<1x8x8xf32>
      %107 = vector.shape_cast %106 : vector<1x8x8xf32> to vector<8x8xf32>
      %108 = vector.shape_cast %104 : vector<8x8xf32> to vector<1x8x8xf32>
      tpu.vector_store %arg9[%105, %c0_72, %c0_73], %108 {strides = array<i32>} : memref<4x8x8xf32, #tpu.memory_space<vmem>>, vector<1x8x8xf32>,
    }
    %c4_i32_39 = arith.constant 4 : i32
    %c0_40 = arith.constant 0 : index
    %c0_41 = arith.constant 0 : index
    %c0_42 = arith.constant 0 : index
    %59 = vector.load %arg9[%c0_40, %c0_41, %c0_42] : memref<4x8x8xf32, #tpu.memory_space<vmem>>, vector<1x8x8xf32>
    %60 = vector.shape_cast %59 : vector<1x8x8xf32> to vector<8x8xf32>
    %c1_43 = arith.constant 1 : index
    %c0_44 = arith.constant 0 : index
    %c0_45 = arith.constant 0 : index
    %61 = vector.load %arg9[%c1_43, %c0_44, %c0_45] : memref<4x8x8xf32, #tpu.memory_space<vmem>>, vector<1x8x8xf32>
    %62 = vector.shape_cast %61 : vector<1x8x8xf32> to vector<8x8xf32>
    %c2_46 = arith.constant 2 : index
    %c0_47 = arith.constant 0 : index
    %c0_48 = arith.constant 0 : index
    %63 = vector.load %arg9[%c2_46, %c0_47, %c0_48] : memref<4x8x8xf32, #tpu.memory_space<vmem>>, vector<1x8x8xf32>
    %64 = vector.shape_cast %63 : vector<1x8x8xf32> to vector<8x8xf32>
    %c3_49 = arith.constant 3 : index
    %c0_50 = arith.constant 0 : index
    %c0_51 = arith.constant 0 : index
    %65 = vector.load %arg9[%c3_49, %c0_50, %c0_51] : memref<4x8x8xf32, #tpu.memory_space<vmem>>, vector<1x8x8xf32>
    %66 = vector.shape_cast %65 : vector<1x8x8xf32> to vector<8x8xf32>
    %67 = tpu.concatenate %60, %62, %64, %66 in 1 : vector<8x8xf32>, vector<8x8xf32>, vector<8x8xf32>, vector<8x8xf32> -> vector<8x32xf32>
    %68 = arith.truncf %67 : vector<8x32xf32> to vector<8x32xbf16>
    %c0_52 = arith.constant 0 : index
    %c0_53 = arith.constant 0 : index
    %69 = vector.load %arg3[%c0_52, %c0_53] : memref<32x32xbf16, #tpu.memory_space<vmem>>, vector<32x32xbf16>
    %cst_54 = arith.constant dense<0.000000e+00> : vector<8x32xf32>
    %70 = tpu.matmul %68, %69, %cst_54 {dimension_numbers = #tpu.dot_dimension_numbers<[1], [0], [0], [1], [0, 0, 1, 1], [], []>} : vector<8x32xbf16>, vector<32x32xbf16>, vector<8x32xf32> -> vector<8x32xf32>
    %c0_55 = arith.constant 0 : index
    %c0_56 = arith.constant 0 : index
    %71 = vector.load %arg4[%c0_55, %c0_56] : memref<1x32xf32, #tpu.memory_space<vmem>>, vector<1x32xf32>
    %72 = vector.broadcast %71 : vector<1x32xf32> to vector<8x32xf32>
    %73 = arith.addf %70, %72 : vector<8x32xf32>
    %c0_57 = arith.constant 0 : index
    %c0_58 = arith.constant 0 : index
    %c0_59 = arith.constant 0 : index
    %74 = vector.load %arg5[%c0_57, %c0_58, %c0_59] : memref<1x8x32xf32, #tpu.memory_space<vmem>>, vector<1x8x32xf32>
    %75 = vector.shape_cast %74 : vector<1x8x32xf32> to vector<8x32xf32>
    %76 = vector.shape_cast %73 : vector<8x32xf32> to vector<1x8x32xf32>
    tpu.vector_store %arg5[%c0_57, %c0_58, %c0_59], %76 {strides = array<i32>} : memref<1x8x32xf32, #tpu.memory_space<vmem>>, vector<1x8x32xf32>,
    return
  }
  func.func @transform_0(%arg0: i32) -> (i32, i32, i32) {
    %c0_i32 = arith.constant 0 : i32
    %c0_i32_0 = arith.constant 0 : i32
    %c0_i32_1 = arith.constant 0 : i32
    return %arg0, %c0_i32, %c0_i32_0 : i32, i32, i32
  }
  func.func @transform_1(%arg0: i32) -> (i32, i32) {
    %c0_i32 = arith.constant 0 : i32
    %c0_i32_0 = arith.constant 0 : i32
    %c0_i32_1 = arith.constant 0 : i32
    return %c0_i32, %c0_i32_0 : i32, i32
  }
  func.func @transform_2(%arg0: i32) -> (i32, i32) {
    %c0_i32 = arith.constant 0 : i32
    %c0_i32_0 = arith.constant 0 : i32
    %c0_i32_1 = arith.constant 0 : i32
    return %c0_i32, %c0_i32_0 : i32, i32
  }
  func.func @transform_3(%arg0: i32) -> (i32, i32) {
    %c0_i32 = arith.constant 0 : i32
    %c0_i32_0 = arith.constant 0 : i32
    %c0_i32_1 = arith.constant 0 : i32
    return %c0_i32, %c0_i32_0 : i32, i32
  }
  func.func @transform_4(%arg0: i32) -> (i32, i32, i32) {
    %c0_i32 = arith.constant 0 : i32
    %c0_i32_0 = arith.constant 0 : i32
    %c0_i32_1 = arith.constant 0 : i32
    return %arg0, %c0_i32, %c0_i32_0 : i32, i32, i32
  }
}

</mosaic_0001>

<bundles_post_ra>
// kernel: tpu_custom_call.1
= control target key start
LH: loop header
LB: loop body
LE: loop exit
PB: predicated region body
PF: predicated region fallthrough
CT: control target
= control target key end

     0   :  { %9 = vsyncpa [#allocation7], 0  ;;  %s1141_s0 = inlined_call_operand.hbm [shape: bf16[2,8,32], index: 0, kind: input, shape index: {}]   ;;  %s1142_s1 = inlined_call_operand.hbm [shape: bf16[32,96], index: 1, kind: input, shape index: {}]   ;;  %s1143_s2 = inlined_call_operand.hbm [shape: bf16[32,32], index: 2, kind: input, shape index: {}]   ;;  %s1144_s3 = inlined_call_operand.vmem [shape: f32[1,32], index: 3, kind: input, shape index: {}]   ;;  %s1145_s4 = inlined_call_operand.hbm [shape: f32[2,8,32], index: 4, kind: output, shape index: {}]  }
   0x1   :  { %11 = vsyncpa [#allocation7 + $0x1], 0 }
   0x2   :  { %12 = vsyncpa [#allocation10], 0 }
   0x3   :  { %13 = vsyncpa [#allocation8], 0 }
   0x4   :  { %15 = vsyncpa [#allocation8 + $0x1], 0  ;;  %s946_s15 = smov 0   ;;  %s948_s16 = smov 0  }
   0x5   :  { %s950_s17 = smov 0   ;;  %s952_s18 = smov 0  }
   0x6 LB: > { %s152_s21 = sshll.u32 %s1142_s1, 4  ;;  %s970_s22 = sadd.s32 4294967295, %s896_s18   ;;  %s896_s18 = sphi %s952_s18, %s1156_s18   ;;  %s892_s17 = sphi %s950_s17, %s1155_s17   ;;  %s888_s16 = sphi %s948_s16, %s1154_s16   ;;  %s884_s15 = sphi %s946_s15, %s1153_s15   ;;  %s153_s21 = int_to_ptr.hbm [resolvable:$true] %s152_s21 }
   0x7   : > { %p595_p0 = scmp.ge.s32.totalorder %s896_s18, 1  ;;  %p42_p1 = scmp.eq.s32.totalorder %s970_s22, 0 }
   0x8   : > { %p141_p2 = scmp.lt.s32.totalorder %s896_s18, 3  ;;  %s902_s24 = smov [#allocation9]  }
   0x9   : > { %s154_s25 = sshll.u32 %s902_s24, 4  ;;  %s166_s28 = sshll.u32 %s1143_s2, 4  ;;  %s155_s25 = int_to_ptr.vmem [resolvable:$true] %s154_s25  ;;  %s167_s28 = int_to_ptr.hbm [resolvable:$true] %s166_s28 }
   0xa   : > { %p975_p3 = pnand %p595_p0, %p141_p2  ;;  %s903_s29 = smov [#allocation11]  }
   0xb   : > { %s168_s30 = sshll.u32 %s903_s29, 4  ;;  %s904_s5 = smov 64   ;;  %s169_s30 = int_to_ptr.vmem [resolvable:$true] %s168_s30 }
   0xc   : > { %p647_p4 = pneg %p975_p3  ;;  %s905_s6 = smov 4  }
   0xd   : > { %s594_s7 = sadd.s32 4294967294, %s896_s18   ;;  %s989_s8 = sadd.s32 1, %s896_s18  }
   0xe   : > { %p648_p6 = pnand %p647_p4, %p42_p1  ;;  %s25_s9 = ssub.s32 %s896_s18, %s989_s8 }
   0xf   : > { %s28_s10 = sadd.s32 1, %s892_s17  ;;  %p26_p7 = scmp.eq.s32.totalorder %s25_s9, 0 }
  0x10   : > { %650 = dma.hbm_to_vmem [thread:$0]  (!%p648_p6), %s153_s21, 256, %s155_s25, [#allocation10], %s904_s5, %s904_s5, %s905_s6  }
  0x11   : > { %653 = dma.hbm_to_vmem [thread:$0]  (!%p648_p6), %s167_s28, 256, %s169_s30, [#allocation10], %s904_s5, %s904_s5, %s905_s6  }
  0x12   : > { %p35_p8 = scmp.ne.s32.totalorder %s892_s17, %s888_s16  ;;  %p36_p9 = scmp.eq.s32.totalorder %s896_s18, 0 }
  0x13   : > { %p41_p10 = scmp.ne.s32.totalorder %s888_s16, %s884_s15  ;;  %p128_p13 = scmp.eq.s32.totalorder %s970_s22, 1 }
  0x14   : > { %s1000_s11 = scalar_select %p26_p7, %s892_s17, %s28_s10  }
  0x15   : > { %p1002_p11 = por %p36_p9, %p35_p8  ;;  %p1008_p12 = por %p42_p1, %p41_p10 }
  0x16   : > { %p134_p0 = scmp.eq.s32.totalorder %s594_s7, 1  ;;  %p664_p2 = scmp.lt.s32.totalorder %s896_s18, 2 }
  0x17   : > { %s185_s14 = sand.u32 1, %s892_s17   ;;  %p1015_p4 = por %p128_p13, %p35_p8 }
  0x18   : > { %p1019_p6 = por %p134_p0, %p41_p10  ;;  %s599_s21 = sshll.u32 %s185_s14, 2 }
  0x19   : > { %s600_s24 = sshll.u32 %s896_s18, 2  ;;  %s189_s28 = scalar_lea.vmem [#allocation6], %s599_s21 }
  0x1a   : > { %s193_s27 = scalar_lea.hbm %s1141_s0, %s600_s24  ;;  %s197_s29 = sshll.u32 %s189_s28, 4  ;;  %s198_s29 = int_to_ptr.vmem [resolvable:$true] %s197_s29 }
  0x1b   : > { %s195_s30 = sshll.u32 %s193_s27, 4  ;;  %p1029_p7 = pnand %p664_p2, %p1002_p11  ;;  %s196_s30 = int_to_ptr.hbm [resolvable:$true] %s195_s30 }
  0x1c   : > { %s186_s6 = scalar_lea.sflag [#allocation7], %s185_s14  ;;  %s792_s7 = sshra.s32 %s196_s30, 4  ;;  %s793_s7 = int_to_ptr.hbm [resolvable:$true] %s792_s7 }
  0x1d   : > { %s794_s9 = scalar_lea.hbm %s793_s7, 4  ;;  %p796_p9 = pneg %p1029_p7 }
  0x1e   : > { %p795_p8 = scmp.ne.s32.totalorder %s793_s7, %s794_s9  ;;  %s799_s24 = scalar_lea.hbm %s1141_s0, 8 }
  0x1f   : > { %p800_p11 = scmp.lt.s32.totalorder %s793_s7, %s1141_s0  ;;  %p801_p0 = scmp.lt.s32.totalorder %s799_s24, %s794_s9 }
  0x20   : > { %p797_p10 = pnand %p796_p9, %p795_p8 }
  0x21   : > { %p802_p2 = por %p801_p0, %p800_p11 }
  0x22   : > { %p798_p13 = pneg %p797_p10 }
  0x24   : > { %p803_p5 = pnand %p802_p2, %p798_p13 }
  0x26   : > { %806 = shalt.err (!%p803_p5)
}
  0x27   : > { %657 = dma.hbm_to_vmem [thread:$0]  (!%p1029_p7), %s196_s30, 64, %s198_s29, %s186_s6  }
  0x28   : > { %206 = sbr.rel (%p975_p3) target bundleno = 1119 (0x45f), region = 36  ;;  %s1046_s14 = sand.u32 (!%p975_p3), 1, %s888_s16  }
  0x29   : > { %s602_s26 = sshll.u32 (!%p975_p3), %s1046_s14, 2  ;;  %s209_s27 = scalar_lea.sflag (!%p975_p3), [#allocation7], %s1046_s14 }
  0x2a   : > { %s212_s28 = scalar_lea.vmem (!%p975_p3), [#allocation6], %s602_s26 }
  0x2d   : > { %871 = dma.done.wait (%p1008_p12), %s209_s27, 64  }
  0x2e   : > { %873 = vsyncadd (%p1008_p12), %s209_s27, 4294967232 }
  0x2f   : > { %875 = dma.done.wait (%p42_p1), [#allocation10], 512  }
  0x30   : > { %877 = vsyncadd (%p42_p1), [#allocation10], 4294966784  ;;  %s605_s23 = sshll.u32 %s1046_s14, 3  ;;  %v632_v0 = vld [vmem:[#allocation9 + $0x8] sm:$0xff]  ;;  %v631_v1 = vld [vmem:[#allocation9] sm:$0xff]  ;;  %vm266_vm0 = vcmask 261120   ;;  %v339_v7 = vlaneseq }
  0x31   : > { %276 = vmatpush.bf16.msra.mxu0 %v632_v0  ;;  %v249_v2 = vld [vmem:[%s212_s28] sm:$0xf]  ;;  %vm283_vm1 = vcmask 64512   ;;  %s906_s13 = smov 56   ;;  %s907_s29 = smov 120  }
  0x32   : > { %s908_s30 = smov 96   ;;  %s909_s5 = smov 112   ;;  %v340_v8 = vshrl.u32 %v339_v7, 7  ;;  %v342_v9 = vand.u32 127, %v339_v7  ;;  %v917_v11 = vmov -1e+30  }
  0x33   : > { %s910_s6 = smov 88   ;;  %s911_s7 = smov 64  }
  0x34   : > { %s912_s9 = smov 104   ;;  %s913_s10 = smov 48   ;;  %vm343_vm2 = vcmp.le.s32.totalorder %v342_v9, %v340_v8 }
  0x35   : > { %277 = vmatpush.bf16.msra.mxu0 %v631_v1  ;;  %s914_s21 = smov 80   ;;  %s915_s24 = smov 40   ;;  %v1064_v12 = vsel %vm343_vm2, 0.0, %v917_v11 }
  0x36   : > { %s916_s25 = smov 72   ;;  %s1076_s12 = scalar_lea.vmem [#allocation12], %s605_s23 }
  0x37   : > { %s1078_s26 = smov 0  }
  0x38   : > { %614 = vmatmul.msk.bf16.vlgmr.msra.gmra.mxu0 %vm266_vm0, %v249_v2 }
  0xb5   : > { %v279_v3 = vpop.f32.mrf.mxu0 }
  0xb6   : > { %304 = vrot.lane.b32.xlu2 %v279_v3, %s906_s13  ;;  %294 = vrot.lane.b32.xlu1 %v279_v3, %s907_s29  ;;  %284 = vst.msk [vmem:[#allocation2] sm:$0xff] %vm283_vm1, %v279_v3 }
  0xb7   : > { %286 = vrot.lane.b32.xlu0 %v279_v3, %s908_s30 }
  0xbd   : > { %v281_v4 = vpop.f32.mrf.mxu0 }
  0xbe   : > { %309 = vrot.lane.b32.xlu2 %v279_v3, %s909_s5  ;;  %299 = vrot.lane.b32.xlu1 %v279_v3, %s910_s6 }
  0xbf   : > { %290 = vrot.lane.b32.xlu0 %v279_v3, %s911_s7 }
  0xc6   : > { %324 = vrot.lane.b32.xlu2 %v279_v3, %s912_s9  ;;  %319 = vrot.lane.b32.xlu1 %v279_v3, %s913_s10 }
  0xc7   : > { %314 = vrot.lane.b32.xlu0 %v279_v3, %s914_s21 }
  0xce   : > { %334 = vrot.lane.b32.xlu1 %v279_v3, %s915_s24 }
  0xcf   : > { %329 = vrot.lane.b32.xlu0 %v279_v3, %s916_s25 }
 0x110   : > { %v305_v5 = vpop.permute.xlu2 %304 }
 0x111   : > { %308 = vst.msk [vmem:[#allocation4 + $0x8] sm:$0xff] %vm283_vm1, %v305_v5 }
 0x118   : > { %v310_v6 = vpop.permute.xlu2 %309 }
 0x119   : > { %313 = vst.msk [vmem:[#allocation2 + $0x10] sm:$0xff] %vm283_vm1, %v310_v6 }
 0x120   : > { %v325_v10 = vpop.permute.xlu2 %324 }
 0x121   : > { %328 = vst.msk [vmem:[#allocation2 + $0x18] sm:$0xff] %vm283_vm1, %v325_v10 }
 0x128   : > { %v295_v13 = vpop.permute.xlu1 %294 }
 0x129   : > { %298 = vst.msk [vmem:[#allocation2 + $0x8] sm:$0xff] %vm283_vm1, %v295_v13  ;;  %v287_v14 = vpop.permute.xlu0 %286 }
 0x12a   : > { %289 = vst.msk [vmem:[#allocation3] sm:$0xff] %vm283_vm1, %v287_v14 }
 0x130   : > { %v300_v15 = vpop.permute.xlu1 %299 }
 0x131   : > { %303 = vst.msk [vmem:[#allocation3 + $0x8] sm:$0xff] %vm283_vm1, %v300_v15  ;;  %v291_v16 = vpop.permute.xlu0 %290 }
 0x132   : > { %293 = vst.msk [vmem:[#allocation4] sm:$0xff] %vm283_vm1, %v291_v16 }
 0x138   : > { %v320_v17 = vpop.permute.xlu1 %319 }
 0x139   : > { %323 = vst.msk [vmem:[#allocation4 + $0x10] sm:$0xff] %vm283_vm1, %v320_v17  ;;  %v315_v18 = vpop.permute.xlu0 %314 }
 0x13a   : > { %318 = vst.msk [vmem:[#allocation3 + $0x10] sm:$0xff] %vm283_vm1, %v315_v18 }
 0x140   : > { %v335_v19 = vpop.permute.xlu1 %334 }
 0x141   : > { %338 = vst.msk [vmem:[#allocation4 + $0x18] sm:$0xff] %vm283_vm1, %v335_v19  ;;  %v330_v20 = vpop.permute.xlu0 %329 }
 0x142   : > { %333 = vst.msk [vmem:[#allocation3 + $0x18] sm:$0xff] %vm283_vm1, %v330_v20 }
 0x143 LB: >> { %s1084_s27 = sshll.u32 %s900_s26, 3  ;;  %vm395_vm3 = vcmask 1043456   ;;  %s350_s26 = sadd.s32 1, %s900_s26   ;;  %s900_s26 = sphi %s1078_s26, %s350_s26  }
 0x144   : >> { %s355_s28 = scalar_lea.vmem [#allocation3], %s1084_s27  ;;  %s352_s23 = scalar_lea.vmem [#allocation2], %s1084_s27 }
 0x145   : >> { %v353_v24 = vld [vmem:[%s352_s23] sm:$0xff]  ;;  %s358_s13 = scalar_lea.vmem [#allocation4], %s1084_s27  ;;  %s412_s29 = scalar_lea.vmem [#allocation5], %s1084_s27 }
 0x146   : >> { %v354_v25 = vpack.c.bf16 %v353_v24, %v353_v24  ;;  %p347_p1 = scmp.ge.s32.totalorder %s350_s26, 4  }
 0x147   : > { %s918_s30 = smov (%p347_p1), 8   ;;  %s919_s5 = smov (%p347_p1), 24   ;;  %v634_v47 = vld [vmem:[#allocation11 + $0x8] sm:$0xff] (%p347_p1)  ;;  %v633_v48 = vld [vmem:[#allocation11] sm:$0xff] (%p347_p1)  ;;  %vm434_vm4 = vcmask (%p347_p1), 130048   ;;  %vm436_vm5 = vcmask (%p347_p1), 195584  }
 0x148   : >> { %v359_v35 = vld [vmem:[%s358_s13] sm:$0xff]  ;;  %s920_s6 = smov (%p347_p1), 16   ;;  %s628_s7 = sshll.u32 (%p347_p1), %s970_s22, 3 }
 0x149   : >> { %v356_v21 = vld [vmem:[%s355_s28] sm:$0xff]  ;;  %v360_v36 = vpack.c.bf16 %v359_v35, %v359_v35  ;;  %s487_s21 = scalar_lea.hbm (%p347_p1), %s1145_s4, %s628_s7  ;;  %s489_s26 = sshll.u32 (%p347_p1), %s1076_s12, 4  ;;  %s490_s26 = int_to_ptr.vmem [resolvable:$true] %s489_s26 }
 0x14a   : >> { %v357_v22 = vpack.c.bf16 %v356_v21, %v356_v21  ;;  %v731_v57 = vld [vmem:[%s1144_s3] ss:$0 sm:$0xff] (%p347_p1)  ;;  %s491_s27 = sshll.u32 (%p347_p1), %s487_s21, 4  ;;  %s477_s28 = scalar_lea.sflag (%p347_p1), [#allocation8], %s1046_s14  ;;  %s492_s27 = int_to_ptr.hbm [resolvable:$true] %s491_s27 }
 0x14b   : >> { %v397_v37 = vsel %vm395_vm3, %v360_v36, 0  ;;  %s836_s23 = sshra.s32 (%p347_p1), %s492_s27, 4  ;;  %s837_s23 = int_to_ptr.hbm [resolvable:$true] %s836_s23 }
 0x14c   : >> { %v365_v23 = vsel %vm283_vm1, %v357_v22, 0  ;;  %406 = vmatpush.bf16.msra.mxu1 %v397_v37  ;;  %s838_s22 = scalar_lea.hbm (%p347_p1), %s837_s23, 8  ;;  %p843_p7 = scmp.lt.s32.totalorder (%p347_p1), %s837_s23, %s1145_s4 }
 0x14d   : >> { %374 = vmatpush.bf16.xpose.msra.mxu0 %v365_v23  ;;  %p839_p3 = scmp.ne.s32.totalorder (%p347_p1), %s837_s23, %s838_s22 }
 0x14f   : > { %p840_p5 = pnand (%p347_p1), %p839_p3, %p1015_p4 }
 0x151   : > { %p841_p12 = pneg (%p347_p1), %p840_p5 }
 0x154   : >> { %616 = vmatmul.msk.bf16.vlgmr.msra.gmra.mxu0 %vm283_vm1, %v354_v25 }
 0x155   : > { %468 = vmatpush.bf16.msra.mxu0 (%p347_p1), %v634_v47 }
 0x159   : > { %469 = vmatpush.bf16.msra.mxu0 (%p347_p1), %v633_v48 }
 0x1d1   : >> { %v376_v26 = vpop.f32.mrf.mxu0 }
 0x1d2   : >> { %v377_v27 = vadd.f32 %v376_v26, %v1064_v12 }
 0x1d4   : >> { %v380_v28 = vsel %vm283_vm1, %v377_v27, -inf }
 0x1d5   : >> { %381 = vmax.xlane.f32.xlu0 %v380_v28 }
 0x1d9   : >> { %v378_v29 = vpop.f32.mrf.mxu0 }
 0x248   : >> { %v382_v30 = vpop.xlane.xlu0 %381 }
 0x249   : >> { %v383_v31 = vsub.f32 %v377_v27, %v382_v30 }
 0x24b   : >> { %v384_v32 = vmul.f32 1.442695, %v383_v31 }
 0x24d   : >> { %727 = vpow2.f32 %v384_v32 }
 0x253   : >> { %v728_v33 = vpop.eup %727 }
 0x254   : >> { %v386_v34 = vsel %vm283_vm1, %v728_v33, 0.0 }
 0x255   : >> { %387 = vadd.xlane.f32.xlu0 %v386_v34 }
 0x2c8   : >> { %v388_v38 = vpop.xlane.xlu0 %387 }
 0x2c9   : >> { %729 = vrcp.f32 %v388_v38 }
 0x2cf   : >> { %v730_v39 = vpop.eup %729 }
 0x2d0   : >> { %v390_v40 = vmul.f32 %v730_v39, %v728_v33 }
 0x2d2   : >> { %v391_v41 = vpack.c.bf16 %v390_v40, %v390_v40 }
 0x2d4   : >> { %617 = vmatmul.msk.bf16.vlgmr.msra.gmra.mxu1 %vm283_vm1, %v391_v41 }
 0x351   : >> { %v408_v42 = vpop.f32.mrf.mxu1 }
 0x352   : >> { %413 = vst.msk [vmem:[%s412_s29] sm:$0xff] %vm283_vm1, %v408_v42 }
 0x355   : > { %349 = sbr.rel (!%p347_p1) target bundleno = 323 (0x143), region = 112 }
 0x359   : >> { %v410_v43 = vpop.f32.mrf.mxu1  ;;  %v416_v44 = vld [vmem:[#allocation5 + $0x8] sm:$0xff] (%p347_p1)  ;;  %v420_v45 = vld [vmem:[#allocation5 + $0x18] sm:$0xff] (%p347_p1)  ;;  %v418_v46 = vld [vmem:[#allocation5 + $0x10] sm:$0xff] (%p347_p1) }
 0x35a   : > { %422 = vrot.lane.b32.xlu0 %v416_v44, %s918_s30  ;;  %430 = vrot.lane.b32.xlu1 %v420_v45, %s919_s5  ;;  %v414_v50 = vld [vmem:[#allocation5] sm:$0xff]  ;;  %s842_s30 = scalar_lea.hbm %s1145_s4, 16 }
 0x35b   : > { %p844_p8 = scmp.lt.s32.totalorder %s842_s30, %s838_s22 }
 0x35d   : > { %p845_p9 = por %p844_p8, %p843_p7 }
 0x35f   : > { %p846_p10 = pnand %p845_p9, %p841_p12 }
 0x362   : > { %426 = vrot.lane.b32.xlu0 %v418_v46, %s920_s6 }
 0x3cc   : > { %v423_v49 = vpop.permute.xlu0 %422  ;;  %v431_v51 = vpop.permute.xlu1 %430 }
 0x3cd   : > { %v433_v52 = vsel %vm283_vm1, %v414_v50, %v423_v49 }
 0x3d4   : > { %v427_v53 = vpop.permute.xlu0 %426 }
 0x3d5   : > { %v435_v54 = vsel %vm434_vm4, %v433_v52, %v427_v53 }
 0x3d6   : > { %v437_v55 = vsel %vm436_vm5, %v435_v54, %v431_v51 }
 0x3d7   : > { %v438_v56 = vpack.c.bf16 %v437_v55, %v437_v55 }
 0x3d9   : > { %626 = vmatmul.msk.bf16.vlgmr.msra.gmra.mxu0 %vm266_vm0, %v438_v56 }
 0x456   : > { %v471_v58 = vpop.f32.mrf.mxu0 }
 0x457   : > { %v472_v59 = vadd.f32 %v731_v57, %v471_v58 }
 0x459   : > { %475 = vst.msk [vmem:[%s1076_s12] sm:$0xff] %vm266_vm0, %v472_v59 }
 0x45a   : > { %849 = shalt.err (!%p846_p10)
}
 0x45b   : > { %645 = dma.vmem_to_hbm [thread:$0]  (%p1015_p4), %s490_s26, 128, %s492_s27, %s477_s28  }
 0x45e   : > { %v473_v60 = vpop.f32.mrf.mxu0 }
 0x45f PF: > { %s503_s14 = sand.u32 1, %s884_s15   ;;  %p1152_p13 = scmp.ge.s32.totalorder %s896_s18, 2 }
 0x460   : > { %s504_s12 = scalar_lea.sflag [#allocation8], %s503_s14 }
 0x461   : > { %p659_p11 = pnand %p1152_p13, %p1019_p6 }
 0x463   : > { %p660_p0 = pneg %p659_p11 }
 0x465   : > { %879 = dma.done.wait (%p660_p0), %s504_s12, 128  }
 0x466   : > { %881 = vsyncadd (%p660_p0), %s504_s12, 4294967168  ;;  %p18_p2 = scmp.ge.s32.totalorder %s989_s8, 4   ;;  %s1153_s15 = smov %s888_s16 }
 0x467   : > { %s1154_s16 = smov %s892_s17  ;;  %s1155_s17 = smov %s1000_s11 }
 0x468   : > { %s1156_s18 = smov %s989_s8  ;;  %20 = sbr.rel (!%p18_p2) target bundleno = 6 (0x6), region = 123 }
 0x46d   :  { %510 = vsyncpa [#allocation7], 1 }
 0x46e   :  { %512 = vsyncpa [#allocation7 + $0x1], 1 }
 0x46f   :  { %513 = vsyncpa [#allocation10], 1 }
 0x470   :  { %514 = vsyncpa [#allocation8], 1 }
 0x471   :  { %516 = vsyncpa [#allocation8 + $0x1], 1 }

</bundles_post_ra>
